<compile_context>
chip_gen: v7x
topology: tpu7x:2x2x1
jax: 0.10.0
libtpu: 0.0.40
codegen_flags: <defaults>
</compile_context>

<pallas_src>
import functools

import jax
import jax.numpy as jnp
from jax.experimental import pallas as pl
from jax.experimental.pallas import tpu as pltpu

# Logical model dims (PyTorch MyNet).
IN_DIM, HID_DIM, OUT_DIM = 784, 200, 10
# Lane-aligned padded dims used inside the kernel (hidden / output only).
PAD_H, PAD_N = 256, 128


def _round_up(x, m):
    return (x + m - 1) // m * m


def _mlp_kernel(x_ref, w1_ref, b1_ref, w2_ref, b2_ref, o_ref):
    # layer1: (TB, 784) @ (784, 256) + (1, 256), f32 MXU accumulate.
    h = jnp.dot(x_ref[...], w1_ref[...], preferred_element_type=jnp.float32)
    h = h + b1_ref[...]
    # Sigmoid = 1/(1+exp(-h)): exp and approx reciprocal both run on the EUP,
    # so the activation is essentially free next to the MXU work.
    h = pl.reciprocal(1.0 + jnp.exp(-h), approx=True)
    # layer2: (TB, 256) @ (256, 128) + (1, 128).  Padded hidden lanes produce
    # sigmoid(0)=0.5 but the matching zero rows of w2 null them out.
    y = jnp.dot(h, w2_ref[...], preferred_element_type=jnp.float32)
    y = y + b2_ref[...]
    # Lane-dense (TB, 128) unmasked store; wrapper slices back to (B, 10).
    o_ref[...] = y.astype(o_ref.dtype)


def pad_params(w1, b1, w2, b2):
    """Zero-pad (in,out)-layout params once, outside the kernel.

    Only hidden (200->256) and output (10->128) dims are padded; the 784-long
    input dim is untouched so x never has to be re-padded along K.
    """
    w1p = jnp.zeros((IN_DIM, PAD_H), w1.dtype).at[:, :HID_DIM].set(w1)
    b1p = jnp.zeros((1, PAD_H), b1.dtype).at[:, :HID_DIM].set(b1)
    w2p = jnp.zeros((PAD_H, PAD_N), w2.dtype).at[:HID_DIM, :OUT_DIM].set(w2)
    b2p = jnp.zeros((1, PAD_N), b2.dtype).at[:, :OUT_DIM].set(b2)
    return w1p, b1p, w2p, b2p


def _choose_batch_tiling(batch, tile_b):
    """Return (padded_batch, batch_tile).

    Pads only to the 8-row sublane requirement, then splits the batch into
    near-equal tiles of at most `tile_b` rows; >=2 tiles once the batch has
    >=256 rows so both v7x TensorCores get work.
    """
    b_req = _round_up(batch, 8)
    if b_req < 256:
        return b_req, b_req                      # one small tile, no waste
    n_tiles = max(2, -(-b_req // tile_b))        # ceil-div, at least 2 steps
    tb = _round_up(-(-b_req // n_tiles), 8)
    return n_tiles * tb, tb


@functools.partial(jax.jit, static_argnames=("tile_b",))
def mynet_forward(x, w1p, b1p, w2p, b2p, *, tile_b=1024):
    """x: (B, 784) f32; padded params from pad_params(). Returns (B, 10)."""
    assert tile_b >= 8 and tile_b % 8 == 0
    B = x.shape[0]
    b_pad, tb = _choose_batch_tiling(B, tile_b)

    if b_pad == B:
        xp = x
    else:
        # Batch-only pad (a handful of rows); allow_input_fusion below lets
        # XLA fuse this pad into the pallas_call instead of an HBM round-trip.
        xp = jnp.zeros((b_pad, IN_DIM), x.dtype).at[:B, :].set(x)

    grid = (b_pad // tb,)
    flops = 2 * b_pad * (IN_DIM * PAD_H + PAD_H * PAD_N)
    bytes_accessed = 4 * (
        b_pad * IN_DIM + IN_DIM * PAD_H + PAD_H
        + PAD_H * PAD_N + PAD_N + b_pad * PAD_N
    )

    out = pl.pallas_call(
        _mlp_kernel,
        out_shape=jax.ShapeDtypeStruct((b_pad, PAD_N), x.dtype),
        grid=grid,
        in_specs=[
            # x tile: full 784 last dim (== array dim so the 128-multiple rule
            # doesn't apply); batch-pipelined across the grid.
            pl.BlockSpec((tb, IN_DIM), lambda i: (i, 0)),
            pl.BlockSpec((IN_DIM, PAD_H), lambda i: (0, 0)),   # w1 resident
            pl.BlockSpec((1, PAD_H), lambda i: (0, 0)),        # b1 resident
            pl.BlockSpec((PAD_H, PAD_N), lambda i: (0, 0)),    # w2 resident
            pl.BlockSpec((1, PAD_N), lambda i: (0, 0)),        # b2 resident
        ],
        out_specs=pl.BlockSpec((tb, PAD_N), lambda i: (i, 0)),
        compiler_params=pltpu.CompilerParams(
            # Independent batch tiles: shards across both TCs on v7x,
            # harmless on single-TC v5e/v6e.
            dimension_semantics=("parallel",),
            # Allow the (batch-only) wrapper pad of x to fuse into this call.
            allow_input_fusion=[True, False, False, False, False],
        ),
        cost_estimate=pl.CostEstimate(
            flops=flops,
            transcendentals=b_pad * PAD_H,
            bytes_accessed=bytes_accessed,
        ),
    )(xp, w1p, b1p, w2p, b2p)
    return out[:B, :OUT_DIM]


def init_params(key):
    """PyTorch nn.Linear-style init U(-1/sqrt(fan_in), 1/sqrt(fan_in)), stored (in, out)."""
    k1, k2, k3, k4 = jax.random.split(key, 4)
    bound1 = 1.0 / jnp.sqrt(784.0)
    bound2 = 1.0 / jnp.sqrt(200.0)
    w1 = jax.random.uniform(k1, (IN_DIM, HID_DIM), jnp.float32, -bound1, bound1)
    b1 = jax.random.uniform(k2, (1, HID_DIM), jnp.float32, -bound1, bound1)
    w2 = jax.random.uniform(k3, (HID_DIM, OUT_DIM), jnp.float32, -bound2, bound2)
    b2 = jax.random.uniform(k4, (1, OUT_DIM), jnp.float32, -bound2, bound2)
    return w1, b1, w2, b2


def reference_forward(x, w1, b1, w2, b2):
    h = jax.nn.sigmoid(x @ w1 + b1)
    return h @ w2 + b2


if __name__ == "__main__":
    key = jax.random.PRNGKey(0)
    kx, kp = jax.random.split(key)
    B = 8
    x = jax.random.normal(kx, (B, IN_DIM), jnp.float32)
    w1, b1, w2, b2 = init_params(kp)
    w1p, b1p, w2p, b2p = pad_params(w1, b1, w2, b2)

    out = mynet_forward(x, w1p, b1p, w2p, b2p)
    out = jax.block_until_ready(out)

    ref = reference_forward(x, w1, b1, w2, b2)
    assert out.shape == (B, OUT_DIM)
    # Tolerance slightly looser than before: the approx (EUP) reciprocal in
    # the sigmoid is ~12-bit, everything else stays f32.
    max_err = float(jnp.max(jnp.abs(out - ref)))
    assert jnp.allclose(out, ref, atol=5e-3, rtol=5e-3), max_err

    print("KERNEL_OK")
</pallas_src>

<mosaic_0001>
module attributes {stable_mosaic.version = 11 : i64} {
  func.func @_mlp_kernel(%arg0: i32, %arg1: memref<8x784xf32, #tpu.memory_space<vmem>>, %arg2: memref<784x256xf32, #tpu.memory_space<vmem>>, %arg3: memref<1x256xf32, #tpu.memory_space<vmem>>, %arg4: memref<256x128xf32, #tpu.memory_space<vmem>>, %arg5: memref<1x128xf32, #tpu.memory_space<vmem>>, %arg6: memref<8x128xf32, #tpu.memory_space<vmem>>) attributes {dimension_semantics = [#tpu.dimension_semantics<parallel>], iteration_bounds = array<i64: 1>, scalar_prefetch = 0 : i64, scratch_operands = 0 : i64, tpu.core_type = #tpu.core_type<tc>, window_params = [{transform_indices = @transform_0, window_bounds = array<i64: 8, 784>}, {pipeline_mode = #tpu.pipeline_mode<synchronous>, transform_indices = @transform_1, window_bounds = array<i64: 784, 256>}, {pipeline_mode = #tpu.pipeline_mode<synchronous>, transform_indices = @transform_2, window_bounds = array<i64: 1, 256>}, {pipeline_mode = #tpu.pipeline_mode<synchronous>, transform_indices = @transform_3, window_bounds = array<i64: 256, 128>}, {pipeline_mode = #tpu.pipeline_mode<synchronous>, transform_indices = @transform_4, window_bounds = array<i64: 1, 128>}, {transform_indices = @transform_5, window_bounds = array<i64: 8, 128>}]} {
    %c0 = arith.constant 0 : index
    %c0_0 = arith.constant 0 : index
    %0 = vector.load %arg1[%c0, %c0_0] : memref<8x784xf32, #tpu.memory_space<vmem>>, vector<8x784xf32>
    %c0_1 = arith.constant 0 : index
    %c0_2 = arith.constant 0 : index
    %1 = vector.load %arg2[%c0_1, %c0_2] : memref<784x256xf32, #tpu.memory_space<vmem>>, vector<784x256xf32>
    %cst = arith.constant dense<0.000000e+00> : vector<8x256xf32>
    %2 = tpu.matmul %0, %1, %cst {dimension_numbers = #tpu.dot_dimension_numbers<[1], [0], [0], [1], [0, 0, 1, 1], [], []>} : vector<8x784xf32>, vector<784x256xf32>, vector<8x256xf32> -> vector<8x256xf32>
    %c0_3 = arith.constant 0 : index
    %c0_4 = arith.constant 0 : index
    %3 = vector.load %arg3[%c0_3, %c0_4] : memref<1x256xf32, #tpu.memory_space<vmem>>, vector<1x256xf32>
    %4 = vector.broadcast %3 : vector<1x256xf32> to vector<8x256xf32>
    %5 = arith.addf %2, %4 : vector<8x256xf32>
    %cst_5 = arith.constant 0.000000e+00 : f32
    %6 = vector.broadcast %cst_5 : f32 to vector<8x256xf32>
    %7 = arith.subf %6, %5 : vector<8x256xf32>
    %8 = math.exp %7 : vector<8x256xf32>
    %cst_6 = arith.constant 1.000000e+00 : f32
    %9 = vector.broadcast %cst_6 : f32 to vector<8x256xf32>
    %10 = arith.addf %9, %8 : vector<8x256xf32>
    %11 = tpu.reciprocal %10 {approx = true} : vector<8x256xf32> -> vector<8x256xf32>
    %c0_7 = arith.constant 0 : index
    %c0_8 = arith.constant 0 : index
    %12 = vector.load %arg4[%c0_7, %c0_8] : memref<256x128xf32, #tpu.memory_space<vmem>>, vector<256x128xf32>
    %cst_9 = arith.constant dense<0.000000e+00> : vector<8x128xf32>
    %13 = tpu.matmul %11, %12, %cst_9 {dimension_numbers = #tpu.dot_dimension_numbers<[1], [0], [0], [1], [0, 0, 1, 1], [], []>} : vector<8x256xf32>, vector<256x128xf32>, vector<8x128xf32> -> vector<8x128xf32>
    %c0_10 = arith.constant 0 : index
    %c0_11 = arith.constant 0 : index
    %14 = vector.load %arg5[%c0_10, %c0_11] : memref<1x128xf32, #tpu.memory_space<vmem>>, vector<1x128xf32>
    %15 = vector.broadcast %14 : vector<1x128xf32> to vector<8x128xf32>
    %16 = arith.addf %13, %15 : vector<8x128xf32>
    %c0_12 = arith.constant 0 : index
    %c0_13 = arith.constant 0 : index
    %17 = vector.load %arg6[%c0_12, %c0_13] : memref<8x128xf32, #tpu.memory_space<vmem>>, vector<8x128xf32>
    tpu.vector_store %arg6[%c0_12, %c0_13], %16 {strides = array<i32>} : memref<8x128xf32, #tpu.memory_space<vmem>>, vector<8x128xf32>,
    return
  }
  func.func @transform_0(%arg0: i32) -> (i32, i32) {
    %c0_i32 = arith.constant 0 : i32
    %c0_i32_0 = arith.constant 0 : i32
    return %arg0, %c0_i32 : i32, i32
  }
  func.func @transform_1(%arg0: i32) -> (i32, i32) {
    %c0_i32 = arith.constant 0 : i32
    %c0_i32_0 = arith.constant 0 : i32
    %c0_i32_1 = arith.constant 0 : i32
    return %c0_i32, %c0_i32_0 : i32, i32
  }
  func.func @transform_2(%arg0: i32) -> (i32, i32) {
    %c0_i32 = arith.constant 0 : i32
    %c0_i32_0 = arith.constant 0 : i32
    %c0_i32_1 = arith.constant 0 : i32
    return %c0_i32, %c0_i32_0 : i32, i32
  }
  func.func @transform_3(%arg0: i32) -> (i32, i32) {
    %c0_i32 = arith.constant 0 : i32
    %c0_i32_0 = arith.constant 0 : i32
    %c0_i32_1 = arith.constant 0 : i32
    return %c0_i32, %c0_i32_0 : i32, i32
  }
  func.func @transform_4(%arg0: i32) -> (i32, i32) {
    %c0_i32 = arith.constant 0 : i32
    %c0_i32_0 = arith.constant 0 : i32
    %c0_i32_1 = arith.constant 0 : i32
    return %c0_i32, %c0_i32_0 : i32, i32
  }
  func.func @transform_5(%arg0: i32) -> (i32, i32) {
    %c0_i32 = arith.constant 0 : i32
    %c0_i32_0 = arith.constant 0 : i32
    return %arg0, %c0_i32 : i32, i32
  }
}

</mosaic_0001>

<bundles_post_ra>
// kernel: mynet_forward.1
= control target key start
LH: loop header
LB: loop body
LE: loop exit
PB: predicated region body
PF: predicated region fallthrough
CT: control target
= control target key end

     0   :  { %10 = vsyncpa [#allocation3], 0  ;;  %s1176_s0 = inlined_call_operand.hbm [shape: f32[8,784], index: 0, kind: input, shape index: {}]   ;;  %s1177_s1 = inlined_call_operand.hbm [shape: f32[784,256], index: 1, kind: input, shape index: {}]   ;;  %s1178_s2 = inlined_call_operand.vmem [shape: f32[1,256], index: 2, kind: input, shape index: {}]   ;;  %s1179_s3 = inlined_call_operand.hbm [shape: f32[256,128], index: 3, kind: input, shape index: {}]   ;;  %s1180_s4 = inlined_call_operand.vmem [shape: f32[1,128], index: 4, kind: input, shape index: {}]   ;;  %s1181_s5 = inlined_call_operand.hbm [shape: f32[8,128], index: 5, kind: output, shape index: {}]  }
   0x1   :  { %11 = vsyncpa [#allocation6], 0 }
   0x2   :  { %12 = vsyncpa [#allocation4], 0  ;;  %s1083_s18 = smov [#allocation5]   ;;  %s989_s22 = scalar_lea.hbm %s1177_s1, 25088 }
   0x3   :  { %s28_s19 = sshll.u32 %s1083_s18, 4  ;;  %p990_p0 = scmp.ne.s32.totalorder %s1177_s1, %s989_s22  ;;  %s29_s19 = int_to_ptr.vmem [resolvable:$true] %s28_s19 }
   0x4   :  { %p993_p1 = scmp.lt.u32.totalorder %s989_s22, %s1177_s1 }
   0x6   :  { %p995_p2 = pnand %p993_p1, %p990_p0 }
   0x8   :  { %998 = shalt.err (!%p995_p2)
}
   0x9   :  { %s999_s27 = scalar_lea.vmem %s29_s19, 25088  ;;  %p1004_p4 = scmp.lt.s32.totalorder %s29_s19, %s29_s19 }
   0xa   :  { %p1000_p3 = scmp.ne.s32.totalorder %s29_s19, %s999_s27  ;;  %p1005_p5 = scmp.lt.s32.totalorder %s999_s27, %s999_s27 }
   0xc   :  { %p1006_p6 = por %p1005_p5, %p1004_p4 }
   0xe   :  { %p1007_p7 = pnand %p1006_p6, %p1000_p3 }
  0x10   :  { %1010 = shalt.err (!%p1007_p7)
}
  0x11   :  { %s1084_s28 = smov 256   ;;  %s1085_s29 = smov 16  }
  0x12   :  { %34 = dma.hbm_to_vmem [thread:$0]  %s1177_s1, 25088, %s29_s19, [#allocation6], %s1084_s28, %s1084_s28, %s1085_s29  }
  0x13   :  { %s1086_s7 = smov [#allocation2]   ;;  %s1087_s9 = smov [#allocation7]  }
  0x14   :  { %s19_s8 = sshll.u32 %s1086_s7, 4  ;;  %s42_s10 = sshll.u32 %s1087_s9, 4  ;;  %s20_s8 = int_to_ptr.vmem [resolvable:$true] %s19_s8  ;;  %s43_s10 = int_to_ptr.vmem [resolvable:$true] %s42_s10 }
  0x15   :  { %s1011_s13 = scalar_lea.hbm %s1176_s0, 896 }
  0x16   :  { %p1012_p8 = scmp.ne.s32.totalorder %s1176_s0, %s1011_s13  ;;  %p1015_p9 = scmp.lt.u32.totalorder %s1011_s13, %s1176_s0 }
  0x18   :  { %p1017_p10 = pnand %p1015_p9, %p1012_p8 }
  0x1a   :  { %1020 = shalt.err (!%p1017_p10)
}
  0x1b   :  { %s1021_s1 = scalar_lea.vmem %s20_s8, 896  ;;  %p1026_p12 = scmp.lt.s32.totalorder %s20_s8, %s20_s8 }
  0x1c   :  { %p1022_p11 = scmp.ne.s32.totalorder %s20_s8, %s1021_s1  ;;  %p1027_p13 = scmp.lt.s32.totalorder %s1021_s1, %s1021_s1 }
  0x1e   :  { %p1028_p0 = por %p1027_p13, %p1026_p12 }
  0x20   :  { %p1029_p1 = pnand %p1028_p0, %p1022_p11 }
  0x22   :  { %1032 = shalt.err (!%p1029_p1)
}
  0x23   :  { %22 = dma.hbm_to_vmem [thread:$0]  %s1176_s0, 896, %s20_s8, [#allocation3]  }
  0x24   :  { %s1033_s22 = scalar_lea.hbm %s1179_s3, 4096 }
  0x25   :  { %p1034_p2 = scmp.ne.s32.totalorder %s1179_s3, %s1033_s22  ;;  %p1037_p3 = scmp.lt.u32.totalorder %s1033_s22, %s1179_s3 }
  0x27   :  { %p1039_p4 = pnand %p1037_p3, %p1034_p2 }
  0x29   :  { %1042 = shalt.err (!%p1039_p4)
}
  0x2a   :  { %s1043_s27 = scalar_lea.vmem %s43_s10, 4096  ;;  %p1048_p6 = scmp.lt.s32.totalorder %s43_s10, %s43_s10 }
  0x2b   :  { %p1044_p5 = scmp.ne.s32.totalorder %s43_s10, %s1043_s27  ;;  %p1049_p7 = scmp.lt.s32.totalorder %s1043_s27, %s1043_s27 }
  0x2d   :  { %p1050_p8 = por %p1049_p7, %p1048_p6 }
  0x2f   :  { %p1051_p9 = pnand %p1050_p8, %p1044_p5 }
  0x31   :  { %1054 = shalt.err (!%p1051_p9)
}
  0x32   :  { %s1088_s0 = smov 128   ;;  %s1089_s28 = smov 8  }
  0x33   :  { %48 = dma.hbm_to_vmem [thread:$0]  %s1179_s3, 4096, %s43_s10, [#allocation6], %s1088_s0, %s1088_s0, %s1089_s28  }
  0x34   :  { %1077 = dma.done.wait [#allocation3], 896  }
  0x35   :  { %1078 = vsyncadd [#allocation3], 4294966400 }
  0x36   :  { %1079 = dma.done.wait [#allocation6], 29184  }
  0x37   :  { %1080 = vsyncadd [#allocation6], 4294938112  ;;  %v132_v0 = vld [vmem:[#allocation5 + $0x208] sm:$0xff]  ;;  %v134_v1 = vld [vmem:[#allocation5 + $0x218] sm:$0xff]  ;;  %vm275_vm0 = vcmask 130048   ;;  %s1091_s8 = smov [#allocation8]  }
  0x38   :  { %v131_v2 = vld [vmem:[#allocation5 + $0x200] sm:$0xff]  ;;  %v800_v3 = vpack.c.bf16 %v134_v1, %v132_v0  ;;  %v133_v4 = vld [vmem:[#allocation5 + $0x210] sm:$0xff]  ;;  %v136_v5 = vld [vmem:[#allocation5 + $0x228] sm:$0xff]  ;;  %s689_s9 = sshll.u32 %s1091_s8, 4  ;;  %s690_s9 = int_to_ptr.vmem [resolvable:$true] %s689_s9 }
  0x39   :  { %v138_v6 = vld [vmem:[#allocation5 + $0x238] sm:$0xff]  ;;  %v802_v7 = vpack.c.bf16 %v133_v4, %v131_v2  ;;  %v135_v9 = vld [vmem:[#allocation5 + $0x220] sm:$0xff]  ;;  %v137_v10 = vld [vmem:[#allocation5 + $0x230] sm:$0xff]  ;;  %s1055_s10 = scalar_lea.vmem %s690_s9, 128  ;;  %p1060_p11 = scmp.lt.s32.totalorder %s690_s9, %s690_s9 }
  0x3a   :  { %v804_v8 = vpack.c.bf16 %v138_v6, %v136_v5  ;;  %v140_v11 = vld [vmem:[#allocation5 + $0x248] sm:$0xff]  ;;  %801 = vmatprep.subr.bf16.mxu0 %v800_v3  ;;  %v142_v12 = vld [vmem:[#allocation5 + $0x258] sm:$0xff]  ;;  %v806_v13 = vpack.c.bf16 %v137_v10, %v135_v9  ;;  %v139_v15 = vld [vmem:[#allocation5 + $0x240] sm:$0xff]  ;;  %p1056_p10 = scmp.ne.s32.totalorder %s690_s9, %s1055_s10  ;;  %p1061_p12 = scmp.lt.s32.totalorder %s1055_s10, %s1055_s10 }
  0x3b   :  { %803 = vmatpush1.bf16.msra.mxu0 %v802_v7  ;;  %v808_v14 = vpack.c.bf16 %v142_v12, %v140_v11  ;;  %v141_v16 = vld [vmem:[#allocation5 + $0x250] sm:$0xff]  ;;  %v144_v17 = vld [vmem:[#allocation5 + $0x268] sm:$0xff]  ;;  %v146_v18 = vld [vmem:[#allocation5 + $0x278] sm:$0xff] }
  0x3c   :  { %805 = vmatprep.subr.bf16.mxu0 %v804_v8  ;;  %v810_v19 = vpack.c.bf16 %v141_v16, %v139_v15  ;;  %v812_v20 = vpack.c.bf16 %v146_v18, %v144_v17  ;;  %v143_v21 = vld [vmem:[#allocation5 + $0x260] sm:$0xff]  ;;  %v145_v22 = vld [vmem:[#allocation5 + $0x270] sm:$0xff]  ;;  %v148_v23 = vld [vmem:[#allocation5 + $0x288] sm:$0xff]  ;;  %p1062_p13 = por %p1061_p12, %p1060_p11 }
  0x3d   :  { %v150_v24 = vld [vmem:[#allocation5 + $0x298] sm:$0xff]  ;;  %v814_v25 = vpack.c.bf16 %v145_v22, %v143_v21  ;;  %v147_v27 = vld [vmem:[#allocation5 + $0x280] sm:$0xff]  ;;  %v149_v28 = vld [vmem:[#allocation5 + $0x290] sm:$0xff] }
  0x3e   :  { %v816_v26 = vpack.c.bf16 %v150_v24, %v148_v23  ;;  %v152_v29 = vld [vmem:[#allocation5 + $0x2a8] sm:$0xff]  ;;  %v154_v30 = vld [vmem:[#allocation5 + $0x2b8] sm:$0xff]  ;;  %v818_v31 = vpack.c.bf16 %v149_v28, %v147_v27  ;;  %v151_v33 = vld [vmem:[#allocation5 + $0x2a0] sm:$0xff]  ;;  %p1063_p0 = pnand %p1062_p13, %p1056_p10 }
  0x3f   :  { %807 = vmatpush1.bf16.msra.mxu0 %v806_v13  ;;  %v820_v32 = vpack.c.bf16 %v154_v30, %v152_v29  ;;  %v153_v34 = vld [vmem:[#allocation5 + $0x2b0] sm:$0xff]  ;;  %v156_v35 = vld [vmem:[#allocation5 + $0x2c8] sm:$0xff]  ;;  %v158_v36 = vld [vmem:[#allocation5 + $0x2d8] sm:$0xff] }
  0x40   :  { %809 = vmatprep.subr.bf16.mxu0 %v808_v14  ;;  %v822_v37 = vpack.c.bf16 %v153_v34, %v151_v33  ;;  %v155_v38 = vld [vmem:[#allocation5 + $0x2c0] sm:$0xff]  ;;  %v157_v39 = vld [vmem:[#allocation5 + $0x2d0] sm:$0xff]  ;;  %v68_v40 = vld [vmem:[#allocation5 + $0x8] sm:$0xff]  ;;  %v824_v41 = vpack.c.bf16 %v158_v36, %v156_v35 }
  0x41   :  { %v160_v42 = vld [vmem:[#allocation5 + $0x2e8] sm:$0xff]  ;;  %v162_v43 = vld [vmem:[#allocation5 + $0x2f8] sm:$0xff]  ;;  %v67_v46 = vld [vmem:[#allocation5] sm:$0xff]  ;;  %v826_v51 = vpack.c.bf16 %v157_v39, %v155_v38 }
  0x42   :  { %v70_v44 = vld [vmem:[#allocation5 + $0x18] sm:$0xff]  ;;  %v69_v47 = vld [vmem:[#allocation5 + $0x10] sm:$0xff]  ;;  %v63_v48 = vld [vmem:[#allocation2 + $0x18] sm:$0xff]  ;;  %v828_v54 = vpack.c.bf16 %v162_v43, %v160_v42 }
  0x43   :  { %811 = vmatpush1.bf16.msra.mxu0 %v810_v19  ;;  %v736_v45 = vpack.c.bf16 %v70_v44, %v68_v40  ;;  %v738_v49 = vpack.c.bf16 %v69_v47, %v67_v46  ;;  %414 = vmatprep.mubr.f32.mxu0 %v63_v48  ;;  %v72_v50 = vld [vmem:[#allocation5 + $0x28] sm:$0xff]  ;;  %v159_v52 = vld [vmem:[#allocation5 + $0x2e0] sm:$0xff]  ;;  %v74_v53 = vld [vmem:[#allocation5 + $0x38] sm:$0xff] }
  0x44   :  { %813 = vmatprep.subr.bf16.mxu0 %v812_v20  ;;  %v161_v55 = vld [vmem:[#allocation5 + $0x2f0] sm:$0xff]  ;;  %v740_v56 = vpack.c.bf16 %v74_v53, %v72_v50  ;;  %v71_v57 = vld [vmem:[#allocation5 + $0x20] sm:$0xff]  ;;  %v164_v59 = vld [vmem:[#allocation5 + $0x308] sm:$0xff] }
  0x45   :  { %737 = vmatprep.subr.bf16.mxu1 %v736_v45  ;;  %v73_v58 = vld [vmem:[#allocation5 + $0x30] sm:$0xff]  ;;  %v166_v60 = vld [vmem:[#allocation5 + $0x318] sm:$0xff]  ;;  %v76_v62 = vld [vmem:[#allocation5 + $0x48] sm:$0xff]  ;;  %v830_v0 = vpack.c.bf16 %v161_v55, %v159_v52 }
  0x46   :  { %739 = vmatpush1.bf16.msra.mxu1 %v738_v49  ;;  %v742_v61 = vpack.c.bf16 %v73_v58, %v71_v57  ;;  %v78_v63 = vld [vmem:[#allocation5 + $0x58] sm:$0xff]  ;;  %v163_v1 = vld [vmem:[#allocation5 + $0x300] sm:$0xff]  ;;  %v77_v4 = vld [vmem:[#allocation5 + $0x50] sm:$0xff]  ;;  %v832_v5 = vpack.c.bf16 %v166_v60, %v164_v59 }
  0x47   :  { %815 = vmatpush1.bf16.msra.mxu0 %v814_v25  ;;  %741 = vmatprep.subr.bf16.mxu1 %v740_v56  ;;  %v744_v2 = vpack.c.bf16 %v78_v63, %v76_v62  ;;  %v75_v3 = vld [vmem:[#allocation5 + $0x40] sm:$0xff]  ;;  %v165_v6 = vld [vmem:[#allocation5 + $0x310] sm:$0xff]  ;;  %v80_v8 = vld [vmem:[#allocation5 + $0x68] sm:$0xff] }
  0x48   :  { %817 = vmatprep.subr.bf16.mxu0 %v816_v26  ;;  %v746_v7 = vpack.c.bf16 %v77_v4, %v75_v3  ;;  %v82_v9 = vld [vmem:[#allocation5 + $0x78] sm:$0xff]  ;;  %v168_v10 = vld [vmem:[#allocation5 + $0x328] sm:$0xff]  ;;  %v79_v13 = vld [vmem:[#allocation5 + $0x60] sm:$0xff]  ;;  %v834_v15 = vpack.c.bf16 %v165_v6, %v163_v1 }
  0x49   :  { %v170_v11 = vld [vmem:[#allocation5 + $0x338] sm:$0xff]  ;;  %v748_v12 = vpack.c.bf16 %v82_v9, %v80_v8  ;;  %v81_v14 = vld [vmem:[#allocation5 + $0x70] sm:$0xff]  ;;  %v84_v16 = vld [vmem:[#allocation5 + $0x88] sm:$0xff] }
  0x4a   :  { %743 = vmatpush1.bf16.msra.mxu1 %v742_v61  ;;  %v86_v17 = vld [vmem:[#allocation5 + $0x98] sm:$0xff]  ;;  %v836_v18 = vpack.c.bf16 %v170_v11, %v168_v10  ;;  %v167_v19 = vld [vmem:[#allocation5 + $0x320] sm:$0xff]  ;;  %v169_v20 = vld [vmem:[#allocation5 + $0x330] sm:$0xff]  ;;  %v750_v22 = vpack.c.bf16 %v81_v14, %v79_v13 }
  0x4b   :  { %819 = vmatpush1.bf16.msra.mxu0 %v818_v31  ;;  %745 = vmatprep.subr.bf16.mxu1 %v744_v2  ;;  %v172_v21 = vld [vmem:[#allocation5 + $0x348] sm:$0xff]  ;;  %v174_v23 = vld [vmem:[#allocation5 + $0x358] sm:$0xff]  ;;  %v752_v24 = vpack.c.bf16 %v86_v17, %v84_v16  ;;  %v83_v25 = vld [vmem:[#allocation5 + $0x80] sm:$0xff]  ;;  %v838_v29 = vpack.c.bf16 %v169_v20, %v167_v19 }
  0x4c   :  { %821 = vmatprep.subr.bf16.mxu0 %v820_v32  ;;  %v85_v26 = vld [vmem:[#allocation5 + $0x90] sm:$0xff]  ;;  %v88_v27 = vld [vmem:[#allocation5 + $0xa8] sm:$0xff]  ;;  %v90_v28 = vld [vmem:[#allocation5 + $0xb8] sm:$0xff]  ;;  %v840_v30 = vpack.c.bf16 %v174_v23, %v172_v21 }
  0x4d   :  { %v171_v31 = vld [vmem:[#allocation5 + $0x340] sm:$0xff]  ;;  %v173_v32 = vld [vmem:[#allocation5 + $0x350] sm:$0xff]  ;;  %v176_v33 = vld [vmem:[#allocation5 + $0x368] sm:$0xff]  ;;  %v754_v34 = vpack.c.bf16 %v85_v26, %v83_v25  ;;  %v756_v36 = vpack.c.bf16 %v90_v28, %v88_v27 }
  0x4e   :  { %747 = vmatpush1.bf16.msra.mxu1 %v746_v7  ;;  %v178_v35 = vld [vmem:[#allocation5 + $0x378] sm:$0xff]  ;;  %v89_v38 = vld [vmem:[#allocation5 + $0xb0] sm:$0xff]  ;;  %v92_v39 = vld [vmem:[#allocation5 + $0xc8] sm:$0xff] }
  0x4f   :  { %823 = vmatpush1.bf16.msra.mxu0 %v822_v37  ;;  %749 = vmatprep.subr.bf16.mxu1 %v748_v12  ;;  %v87_v37 = vld [vmem:[#allocation5 + $0xa0] sm:$0xff]  ;;  %v94_v40 = vld [vmem:[#allocation5 + $0xd8] sm:$0xff]  ;;  %v844_v42 = vpack.c.bf16 %v178_v35, %v176_v33  ;;  %v177_v44 = vld [vmem:[#allocation5 + $0x370] sm:$0xff] }
  0x50   :  { %825 = vmatprep.subr.bf16.mxu0 %v824_v41  ;;  %v842_v41 = vpack.c.bf16 %v173_v32, %v171_v31  ;;  %v175_v43 = vld [vmem:[#allocation5 + $0x360] sm:$0xff]  ;;  %v180_v45 = vld [vmem:[#allocation5 + $0x388] sm:$0xff]  ;;  %v758_v46 = vpack.c.bf16 %v89_v38, %v87_v37  ;;  %v182_v47 = vld [vmem:[#allocation5 + $0x398] sm:$0xff]  ;;  %v760_v48 = vpack.c.bf16 %v94_v40, %v92_v39 }
  0x51   :  { %v91_v49 = vld [vmem:[#allocation5 + $0xc0] sm:$0xff]  ;;  %v93_v50 = vld [vmem:[#allocation5 + $0xd0] sm:$0xff]  ;;  %v98_v52 = vld [vmem:[#allocation5 + $0xf8] sm:$0xff]  ;;  %v846_v53 = vpack.c.bf16 %v177_v44, %v175_v43 }
  0x52   :  { %751 = vmatpush1.bf16.msra.mxu1 %v750_v22  ;;  %v179_v55 = vld [vmem:[#allocation5 + $0x380] sm:$0xff]  ;;  %v181_v56 = vld [vmem:[#allocation5 + $0x390] sm:$0xff]  ;;  %v184_v57 = vld [vmem:[#allocation5 + $0x3a8] sm:$0xff]  ;;  %v762_v58 = vpack.c.bf16 %v93_v50, %v91_v49 }
  0x53   :  { %827 = vmatpush1.bf16.msra.mxu0 %v826_v51  ;;  %753 = vmatprep.subr.bf16.mxu1 %v752_v24  ;;  %v96_v51 = vld [vmem:[#allocation5 + $0xe8] sm:$0xff]  ;;  %v186_v59 = vld [vmem:[#allocation5 + $0x3b8] sm:$0xff]  ;;  %v95_v61 = vld [vmem:[#allocation5 + $0xe0] sm:$0xff]  ;;  %v850_v1 = vpack.c.bf16 %v181_v56, %v179_v55 }
  0x54   :  { %829 = vmatprep.subr.bf16.mxu0 %v828_v54  ;;  %v848_v54 = vpack.c.bf16 %v182_v47, %v180_v45  ;;  %v764_v60 = vpack.c.bf16 %v98_v52, %v96_v51  ;;  %v97_v62 = vld [vmem:[#allocation5 + $0xf0] sm:$0xff]  ;;  %v100_v63 = vld [vmem:[#allocation5 + $0x108] sm:$0xff]  ;;  %v852_v2 = vpack.c.bf16 %v186_v59, %v184_v57  ;;  %v183_v3 = vld [vmem:[#allocation5 + $0x3a0] sm:$0xff] }
  0x55   :  { %v185_v4 = vld [vmem:[#allocation5 + $0x3b0] sm:$0xff]  ;;  %v766_v6 = vpack.c.bf16 %v97_v62, %v95_v61  ;;  %v190_v7 = vld [vmem:[#allocation5 + $0x3d8] sm:$0xff]  ;;  %v99_v9 = vld [vmem:[#allocation5 + $0x100] sm:$0xff] }
  0x56   :  { %755 = vmatpush1.bf16.msra.mxu1 %v754_v34  ;;  %v101_v10 = vld [vmem:[#allocation5 + $0x110] sm:$0xff]  ;;  %v104_v11 = vld [vmem:[#allocation5 + $0x128] sm:$0xff]  ;;  %v106_v12 = vld [vmem:[#allocation5 + $0x138] sm:$0xff]  ;;  %v854_v13 = vpack.c.bf16 %v185_v4, %v183_v3 }
  0x57   :  { %831 = vmatpush1.bf16.msra.mxu0 %v830_v0  ;;  %757 = vmatprep.subr.bf16.mxu1 %v756_v36  ;;  %v102_v0 = vld [vmem:[#allocation5 + $0x118] sm:$0xff]  ;;  %v189_v16 = vld [vmem:[#allocation5 + $0x3d0] sm:$0xff]  ;;  %v192_v17 = vld [vmem:[#allocation5 + $0x3e8] sm:$0xff]  ;;  %v772_v20 = vpack.c.bf16 %v106_v12, %v104_v11 }
  0x58   :  { %833 = vmatprep.subr.bf16.mxu0 %v832_v5  ;;  %v188_v5 = vld [vmem:[#allocation5 + $0x3c8] sm:$0xff]  ;;  %v768_v8 = vpack.c.bf16 %v102_v0, %v100_v63  ;;  %v194_v19 = vld [vmem:[#allocation5 + $0x3f8] sm:$0xff]  ;;  %v103_v21 = vld [vmem:[#allocation5 + $0x120] sm:$0xff] }
  0x59   :  { %v856_v14 = vpack.c.bf16 %v190_v7, %v188_v5  ;;  %v105_v22 = vld [vmem:[#allocation5 + $0x130] sm:$0xff]  ;;  %v108_v23 = vld [vmem:[#allocation5 + $0x148] sm:$0xff]  ;;  %v110_v24 = vld [vmem:[#allocation5 + $0x158] sm:$0xff]  ;;  %v860_v26 = vpack.c.bf16 %v194_v19, %v192_v17 }
  0x5a   :  { %759 = vmatpush1.bf16.msra.mxu1 %v758_v46  ;;  %v191_v27 = vld [vmem:[#allocation5 + $0x3e0] sm:$0xff]  ;;  %v193_v28 = vld [vmem:[#allocation5 + $0x3f0] sm:$0xff]  ;;  %v198_v31 = vld [vmem:[#allocation5 + $0x418] sm:$0xff]  ;;  %v776_v32 = vpack.c.bf16 %v110_v24, %v108_v23 }
  0x5b   :  { %835 = vmatpush1.bf16.msra.mxu0 %v834_v15  ;;  %761 = vmatprep.subr.bf16.mxu1 %v760_v48  ;;  %v187_v15 = vld [vmem:[#allocation5 + $0x3c0] sm:$0xff]  ;;  %v109_v34 = vld [vmem:[#allocation5 + $0x150] sm:$0xff]  ;;  %v112_v35 = vld [vmem:[#allocation5 + $0x168] sm:$0xff]  ;;  %v862_v37 = vpack.c.bf16 %v193_v28, %v191_v27 }
  0x5c   :  { %837 = vmatprep.subr.bf16.mxu0 %v836_v18  ;;  %v770_v18 = vpack.c.bf16 %v101_v10, %v99_v9  ;;  %v858_v25 = vpack.c.bf16 %v189_v16, %v187_v15  ;;  %v107_v33 = vld [vmem:[#allocation5 + $0x140] sm:$0xff]  ;;  %v114_v36 = vld [vmem:[#allocation5 + $0x178] sm:$0xff]  ;;  %v197_v40 = vld [vmem:[#allocation5 + $0x410] sm:$0xff] }
  0x5d   :  { %v195_v39 = vld [vmem:[#allocation5 + $0x400] sm:$0xff]  ;;  %v202_v43 = vld [vmem:[#allocation5 + $0x438] sm:$0xff]  ;;  %v780_v44 = vpack.c.bf16 %v114_v36, %v112_v35  ;;  %v113_v46 = vld [vmem:[#allocation5 + $0x170] sm:$0xff] }
  0x5e   :  { %763 = vmatpush1.bf16.msra.mxu1 %v762_v58  ;;  %v111_v45 = vld [vmem:[#allocation5 + $0x160] sm:$0xff]  ;;  %v116_v47 = vld [vmem:[#allocation5 + $0x188] sm:$0xff]  ;;  %v118_v48 = vld [vmem:[#allocation5 + $0x198] sm:$0xff]  ;;  %v866_v51 = vpack.c.bf16 %v197_v40, %v195_v39 }
  0x5f   :  { %839 = vmatpush1.bf16.msra.mxu0 %v838_v29  ;;  %765 = vmatprep.subr.bf16.mxu1 %v764_v60  ;;  %v196_v29 = vld [vmem:[#allocation5 + $0x408] sm:$0xff]  ;;  %v61_v49 = vld [vmem:[#allocation2 + $0x8] sm:$0xff]  ;;  %v62_v50 = vld [vmem:[#allocation2 + $0x10] sm:$0xff]  ;;  %v782_v57 = vpack.c.bf16 %v113_v46, %v111_v45  ;;  %v784_v58 = vpack.c.bf16 %v118_v48, %v116_v47 }
  0x60   :  { %841 = vmatprep.subr.bf16.mxu0 %v840_v30  ;;  %v774_v30 = vpack.c.bf16 %v105_v22, %v103_v21  ;;  %v864_v38 = vpack.c.bf16 %v198_v31, %v196_v29  ;;  %v199_v52 = vld [vmem:[#allocation5 + $0x420] sm:$0xff]  ;;  %343 = vmatprep.mubr.f32.mxu1 %v61_v49  ;;  %v204_v55 = vld [vmem:[#allocation5 + $0x448] sm:$0xff]  ;;  %v206_v56 = vld [vmem:[#allocation5 + $0x458] sm:$0xff] }
  0x61   :  { %v115_v59 = vld [vmem:[#allocation5 + $0x180] sm:$0xff]  ;;  %v117_v60 = vld [vmem:[#allocation5 + $0x190] sm:$0xff]  ;;  %v120_v62 = vld [vmem:[#allocation5 + $0x1a8] sm:$0xff] }
  0x62   :  { %767 = vmatpush1.bf16.msra.mxu1 %v766_v6  ;;  %v65_v61 = vld [vmem:[#allocation2 + $0x28] sm:$0xff]  ;;  %v122_v63 = vld [vmem:[#allocation5 + $0x1b8] sm:$0xff]  ;;  %v208_v4 = vld [vmem:[#allocation5 + $0x468] sm:$0xff]  ;;  %v786_v5 = vpack.c.bf16 %v117_v60, %v115_v59 }
  0x63   :  { %843 = vmatpush1.bf16.msra.mxu0 %v842_v41  ;;  %769 = vmatprep.subr.bf16.mxu1 %v768_v8  ;;  %v200_v41 = vld [vmem:[#allocation5 + $0x428] sm:$0xff]  ;;  %v205_v3 = vld [vmem:[#allocation5 + $0x450] sm:$0xff]  ;;  %v210_v6 = vld [vmem:[#allocation5 + $0x478] sm:$0xff]  ;;  %v788_v7 = vpack.c.bf16 %v122_v63, %v120_v62 }
  0x64   :  { %845 = vmatprep.subr.bf16.mxu0 %v844_v42  ;;  %v778_v42 = vpack.c.bf16 %v109_v34, %v107_v33  ;;  %v119_v8 = vld [vmem:[#allocation5 + $0x1a0] sm:$0xff]  ;;  %v121_v9 = vld [vmem:[#allocation5 + $0x1b0] sm:$0xff]  ;;  %v124_v10 = vld [vmem:[#allocation5 + $0x1c8] sm:$0xff] }
  0x65   :  { %v126_v11 = vld [vmem:[#allocation5 + $0x1d8] sm:$0xff]  ;;  %v209_v15 = vld [vmem:[#allocation5 + $0x470] sm:$0xff]  ;;  %v212_v16 = vld [vmem:[#allocation5 + $0x488] sm:$0xff]  ;;  %v790_v17 = vpack.c.bf16 %v121_v9, %v119_v8 }
  0x66   :  { %771 = vmatpush1.bf16.msra.mxu1 %v770_v18  ;;  %v214_v18 = vld [vmem:[#allocation5 + $0x498] sm:$0xff]  ;;  %v792_v19 = vpack.c.bf16 %v126_v11, %v124_v10  ;;  %v125_v21 = vld [vmem:[#allocation5 + $0x1d0] sm:$0xff]  ;;  %v128_v22 = vld [vmem:[#allocation5 + $0x1e8] sm:$0xff] }
  0x67   :  { %847 = vmatpush1.bf16.msra.mxu0 %v846_v53  ;;  %773 = vmatprep.subr.bf16.mxu1 %v772_v20  ;;  %v868_v53 = vpack.c.bf16 %v202_v43, %v200_v41  ;;  %v123_v20 = vld [vmem:[#allocation5 + $0x1c0] sm:$0xff]  ;;  %v130_v23 = vld [vmem:[#allocation5 + $0x1f8] sm:$0xff]  ;;  %v213_v27 = vld [vmem:[#allocation5 + $0x490] sm:$0xff] }
  0x68   :  { %849 = vmatprep.subr.bf16.mxu0 %v848_v54  ;;  %v201_v54 = vld [vmem:[#allocation5 + $0x430] sm:$0xff]  ;;  %v216_v28 = vld [vmem:[#allocation5 + $0x4a8] sm:$0xff]  ;;  %v794_v29 = vpack.c.bf16 %v125_v21, %v123_v20  ;;  %v796_v31 = vpack.c.bf16 %v130_v23, %v128_v22  ;;  %v262_v35 = vld [vmem:[#allocation5 + $0x618] sm:$0xff] }
  0x69   :  { %v870_v0 = vpack.c.bf16 %v201_v54, %v199_v52  ;;  %v129_v33 = vld [vmem:[#allocation5 + $0x1f0] sm:$0xff]  ;;  %v260_v34 = vld [vmem:[#allocation5 + $0x608] sm:$0xff]  ;;  %v219_v48 = vld [vmem:[#allocation5 + $0x4c0] sm:$0xff] }
  0x6a   :  { %775 = vmatpush1.bf16.msra.mxu1 %v774_v30  ;;  %v218_v30 = vld [vmem:[#allocation5 + $0x4b8] sm:$0xff]  ;;  %v217_v39 = vld [vmem:[#allocation5 + $0x4b0] sm:$0xff]  ;;  %v220_v40 = vld [vmem:[#allocation5 + $0x4c8] sm:$0xff]  ;;  %v928_v43 = vpack.c.bf16 %v262_v35, %v260_v34 }
  0x6b   :  { %851 = vmatpush1.bf16.msra.mxu0 %v850_v1  ;;  %777 = vmatprep.subr.bf16.mxu1 %v776_v32  ;;  %v872_v1 = vpack.c.bf16 %v206_v56, %v204_v55  ;;  %v127_v32 = vld [vmem:[#allocation5 + $0x1e0] sm:$0xff]  ;;  %v261_v45 = vld [vmem:[#allocation5 + $0x610] sm:$0xff]  ;;  %v224_v52 = vld [vmem:[#allocation5 + $0x4e8] sm:$0xff] }
  0x6c   :  { %853 = vmatprep.subr.bf16.mxu0 %v852_v2  ;;  %v203_v2 = vld [vmem:[#allocation5 + $0x440] sm:$0xff]  ;;  %v798_v41 = vpack.c.bf16 %v129_v33, %v127_v32  ;;  %v221_v49 = vld [vmem:[#allocation5 + $0x4d0] sm:$0xff]  ;;  %v228_v59 = vld [vmem:[#allocation5 + $0x508] sm:$0xff] }
  0x6d   :  { %v874_v12 = vpack.c.bf16 %v205_v3, %v203_v2  ;;  %v890_v54 = vpack.c.bf16 %v221_v49, %v219_v48  ;;  %v223_v56 = vld [vmem:[#allocation5 + $0x4e0] sm:$0xff]  ;;  %v230_v60 = vld [vmem:[#allocation5 + $0x518] sm:$0xff]  ;;  %v232_v2 = vld [vmem:[#allocation5 + $0x528] sm:$0xff] }
  0x6e   :  { %779 = vmatpush1.bf16.msra.mxu1 %v778_v42  ;;  %v222_v42 = vld [vmem:[#allocation5 + $0x4d8] sm:$0xff]  ;;  %v896_v63 = vpack.c.bf16 %v230_v60, %v228_v59  ;;  %v236_v8 = vld [vmem:[#allocation5 + $0x548] sm:$0xff]  ;;  %v573_v49 = vld [vmem:[#allocation7] sm:$0xff] }
  0x6f   :  { %855 = vmatpush1.bf16.msra.mxu0 %v854_v13  ;;  %781 = vmatprep.subr.bf16.mxu1 %v780_v44  ;;  %v876_v13 = vpack.c.bf16 %v210_v6, %v208_v4  ;;  %v259_v44 = vld [vmem:[#allocation5 + $0x600] sm:$0xff]  ;;  %v888_v47 = vpack.c.bf16 %v222_v42, %v220_v40  ;;  %v234_v3 = vld [vmem:[#allocation5 + $0x538] sm:$0xff]  ;;  %v244_v20 = vld [vmem:[#allocation5 + $0x588] sm:$0xff] }
  0x70   :  { %857 = vmatprep.subr.bf16.mxu0 %v856_v14  ;;  %v207_v14 = vld [vmem:[#allocation5 + $0x460] sm:$0xff]  ;;  %v238_v9 = vld [vmem:[#allocation5 + $0x558] sm:$0xff]  ;;  %v252_v32 = vld [vmem:[#allocation5 + $0x5c8] sm:$0xff] }
  0x71   :  { %v878_v24 = vpack.c.bf16 %v209_v15, %v207_v14  ;;  %v231_v6 = vld [vmem:[#allocation5 + $0x520] sm:$0xff]  ;;  %v904_v11 = vpack.c.bf16 %v238_v9, %v236_v8  ;;  %v240_v14 = vld [vmem:[#allocation5 + $0x568] sm:$0xff]  ;;  %v242_v15 = vld [vmem:[#allocation5 + $0x578] sm:$0xff] }
  0x72   :  { %783 = vmatpush1.bf16.msra.mxu1 %v782_v57  ;;  %v225_v57 = vld [vmem:[#allocation5 + $0x4f0] sm:$0xff]  ;;  %v246_v21 = vld [vmem:[#allocation5 + $0x598] sm:$0xff]  ;;  %v255_v42 = vld [vmem:[#allocation5 + $0x5e0] sm:$0xff] }
  0x73   :  { %859 = vmatpush1.bf16.msra.mxu0 %v858_v25  ;;  %785 = vmatprep.subr.bf16.mxu1 %v784_v58  ;;  %v880_v25 = vpack.c.bf16 %v214_v18, %v212_v16  ;;  %v66_v58 = vld [vmem:[#allocation2 + $0x30] sm:$0xff]  ;;  %v894_v62 = vpack.c.bf16 %v225_v57, %v223_v56  ;;  %v239_v18 = vld [vmem:[#allocation5 + $0x560] sm:$0xff]  ;;  %v912_v23 = vpack.c.bf16 %v246_v21, %v244_v20  ;;  %v594_v59 = vld [vmem:[#allocation7 + $0xa8] sm:$0xff] }
  0x74   :  { %861 = vmatprep.subr.bf16.mxu0 %v860_v26  ;;  %v211_v26 = vld [vmem:[#allocation5 + $0x480] sm:$0xff]  ;;  %v254_v33 = vld [vmem:[#allocation5 + $0x5d8] sm:$0xff] }
  0x75   :  { %v882_v36 = vpack.c.bf16 %v213_v27, %v211_v26  ;;  %v248_v26 = vld [vmem:[#allocation5 + $0x5a8] sm:$0xff]  ;;  %v250_v27 = vld [vmem:[#allocation5 + $0x5b8] sm:$0xff]  ;;  %v920_v35 = vpack.c.bf16 %v254_v33, %v252_v32  ;;  %v581_v9 = vld [vmem:[#allocation7 + $0x40] sm:$0xff] }
  0x76   :  { %787 = vmatpush1.bf16.msra.mxu1 %v786_v5  ;;  %v900_v5 = vpack.c.bf16 %v234_v3, %v232_v2  ;;  %v576_v56 = vld [vmem:[#allocation7 + $0x18] sm:$0xff]  ;;  %v579_v3 = vld [vmem:[#allocation7 + $0x30] sm:$0xff]  ;;  %v585_v20 = vld [vmem:[#allocation7 + $0x60] sm:$0xff] }
  0x77   :  { %863 = vmatpush1.bf16.msra.mxu0 %v862_v37  ;;  %789 = vmatprep.subr.bf16.mxu1 %v788_v7  ;;  %v884_v37 = vpack.c.bf16 %v218_v30, %v216_v28  ;;  %v233_v7 = vld [vmem:[#allocation5 + $0x530] sm:$0xff]  ;;  %v247_v30 = vld [vmem:[#allocation5 + $0x5a0] sm:$0xff] }
  0x78   :  { %865 = vmatprep.subr.bf16.mxu0 %v864_v38  ;;  %v215_v38 = vld [vmem:[#allocation5 + $0x4a0] sm:$0xff]  ;;  %v902_v10 = vpack.c.bf16 %v233_v7, %v231_v6  ;;  %v598_v7 = vld [vmem:[#allocation7 + $0xc8] sm:$0xff] }
  0x79   :  { %v886_v46 = vpack.c.bf16 %v217_v39, %v215_v38  ;;  %v256_v38 = vld [vmem:[#allocation5 + $0x5e8] sm:$0xff]  ;;  %v258_v39 = vld [vmem:[#allocation5 + $0x5f8] sm:$0xff]  ;;  %v597_v6 = vld [vmem:[#allocation7 + $0xc0] sm:$0xff] }
  0x7a   :  { %415 = vmatmul.mubr.f32.vlgmr.msra.gmra.mrb[0].mxu0 %v62_v50  ;;  %791 = vmatpush1.bf16.msra.mxu1 %v790_v17  ;;  %v60_v50 = vld [vmem:[#allocation2] sm:$0xff]  ;;  %v908_v17 = vpack.c.bf16 %v242_v15, %v240_v14  ;;  %v948_v8 = vpack.c.bf16 %v598_v7, %v597_v6  ;;  %v583_v15 = vld [vmem:[#allocation7 + $0x50] sm:$0xff] }
  0x7b   :  { %867 = vmatpush1.bf16.msra.mxu0 %v866_v51  ;;  %485 = vmatprep.mubr.f32.mxu0 %v65_v61  ;;  %v930_v51 = vpack.c.bf16 %v261_v45, %v259_v44  ;;  %v1090_v61 = vmov 0.0   ;;  %v64_v45 = vld [vmem:[#allocation2 + $0x20] sm:$0xff] }
  0x7c   :  { %869 = vmatprep.subr.bf16.mxu0 %v868_v53  ;;  %793 = vmatprep.subr.bf16.mxu1 %v792_v19  ;;  %v226_v53 = vld [vmem:[#allocation5 + $0x4f8] sm:$0xff]  ;;  %v241_v19 = vld [vmem:[#allocation5 + $0x570] sm:$0xff] }
  0x7d   :  { %v892_v55 = vpack.c.bf16 %v226_v53, %v224_v52  ;;  %v910_v22 = vpack.c.bf16 %v241_v19, %v239_v18  ;;  %v591_v52 = vld [vmem:[#allocation7 + $0x90] sm:$0xff]  ;;  %v592_v53 = vld [vmem:[#allocation7 + $0x98] sm:$0xff]  ;;  %v601_v18 = vld [vmem:[#allocation7 + $0xe0] sm:$0xff] }
  0x7e   :  { %795 = vmatpush1.bf16.msra.mxu1 %v794_v29  ;;  %v916_v29 = vpack.c.bf16 %v250_v27, %v248_v26  ;;  %v602_v19 = vld [vmem:[#allocation7 + $0xe8] sm:$0xff]  ;;  %v587_v27 = vld [vmem:[#allocation7 + $0x70] sm:$0xff] }
  0x7f   :  { %871 = vmatpush1.bf16.msra.mxu0 %v870_v0  ;;  %797 = vmatprep.subr.bf16.mxu1 %v796_v31  ;;  %v227_v0 = vld [vmem:[#allocation5 + $0x500] sm:$0xff]  ;;  %v249_v31 = vld [vmem:[#allocation5 + $0x5b0] sm:$0xff]  ;;  %v956_v21 = vpack.c.bf16 %v602_v19, %v601_v18 }
  0x80   :  { %873 = vmatprep.subr.bf16.mxu0 %v872_v1  ;;  %v229_v1 = vld [vmem:[#allocation5 + $0x510] sm:$0xff]  ;;  %v918_v34 = vpack.c.bf16 %v249_v31, %v247_v30 }
  0x81   :  { %v898_v4 = vpack.c.bf16 %v229_v1, %v227_v0  ;;  %v595_v0 = vld [vmem:[#allocation7 + $0xb0] sm:$0xff]  ;;  %v596_v1 = vld [vmem:[#allocation7 + $0xb8] sm:$0xff] }
  0x82   :  { %799 = vmatpush1.bf16.msra.mxu1 %v798_v41  ;;  %v924_v41 = vpack.c.bf16 %v258_v39, %v256_v38  ;;  %v944_v2 = vpack.c.bf16 %v596_v1, %v595_v0 }
  0x83   :  { %875 = vmatpush1.bf16.msra.mxu0 %v874_v12  ;;  %929 = vmatprep.subr.bf16.mxu1 %v928_v43  ;;  %v235_v12 = vld [vmem:[#allocation5 + $0x540] sm:$0xff]  ;;  %v257_v43 = vld [vmem:[#allocation5 + $0x5f0] sm:$0xff] }
  0x84   :  { %877 = vmatprep.subr.bf16.mxu0 %v876_v13  ;;  %v237_v13 = vld [vmem:[#allocation5 + $0x550] sm:$0xff]  ;;  %v926_v44 = vpack.c.bf16 %v257_v43, %v255_v42 }
  0x85   :  { %344 = vmatmul.mubr.f32.vlgmr.msra.gmra.mrb[0].mxu1 %v60_v50  ;;  %v906_v16 = vpack.c.bf16 %v237_v13, %v235_v12  ;;  %v574_v50 = vld [vmem:[#allocation7 + $0x8] sm:$0xff]  ;;  %v599_v12 = vld [vmem:[#allocation7 + $0xd0] sm:$0xff]  ;;  %v600_v13 = vld [vmem:[#allocation7 + $0xd8] sm:$0xff] }
  0x86   :  { %931 = vmatpush1.bf16.msra.mxu1 %v930_v51  ;;  %556 = vmatprep.mubr.f32.mxu1 %v1090_v61  ;;  %v934_v51 = vpack.c.bf16 %v574_v50, %v573_v49  ;;  %v577_v61 = vld [vmem:[#allocation7 + $0x20] sm:$0xff]  ;;  %v952_v14 = vpack.c.bf16 %v600_v13, %v599_v12 }
  0x87   :  { %879 = vmatpush1.bf16.msra.mxu0 %v878_v24  ;;  %v243_v24 = vld [vmem:[#allocation5 + $0x580] sm:$0xff] }
  0x88   :  { %881 = vmatprep.subr.bf16.mxu0 %v880_v25  ;;  %v245_v25 = vld [vmem:[#allocation5 + $0x590] sm:$0xff] }
  0x89   :  { %699 = vmatmul.mubr.msk.f32.vlgmr.msra.gmra.mrb[2].mxu1 %vm275_vm0, %v66_v58  ;;  %v914_v28 = vpack.c.bf16 %v245_v25, %v243_v24  ;;  %v593_v58 = vld [vmem:[#allocation7 + $0xa0] sm:$0xff]  ;;  %v604_v24 = vld [vmem:[#allocation7 + $0xf8] sm:$0xff] }
  0x8a   :  { %v940_v60 = vpack.c.bf16 %v594_v59, %v593_v58 }
  0x8b   :  { %883 = vmatpush1.bf16.msra.mxu0 %v882_v36  ;;  %v251_v36 = vld [vmem:[#allocation5 + $0x5c0] sm:$0xff] }
  0x8c   :  { %885 = vmatprep.subr.bf16.mxu0 %v884_v37  ;;  %v253_v37 = vld [vmem:[#allocation5 + $0x5d0] sm:$0xff] }
  0x8d   :  { %v922_v40 = vpack.c.bf16 %v253_v37, %v251_v36  ;;  %v263_v37 = vld [vmem:[%s1178_s2] sm:$0x3] }
  0x8f   :  { %887 = vmatpush1.bf16.msra.mxu0 %v886_v46  ;;  %v589_v46 = vld [vmem:[#allocation7 + $0x80] sm:$0xff] }
  0x90   :  { %889 = vmatprep.subr.bf16.mxu0 %v888_v47  ;;  %v590_v47 = vld [vmem:[#allocation7 + $0x88] sm:$0xff] }
  0x91   :  { %v932_v48 = vpack.c.bf16 %v590_v47, %v589_v46 }
  0x93   :  { %891 = vmatpush1.bf16.msra.mxu0 %v890_v54  ;;  %933 = vmatprep.subr.bf16.mxu1 %v932_v48  ;;  %v936_v54 = vpack.c.bf16 %v592_v53, %v591_v52 }
  0x94   :  { %893 = vmatprep.subr.bf16.mxu0 %v892_v55  ;;  %935 = vmatpush3.bf16.msra.mxu1 %v934_v51  ;;  %v575_v55 = vld [vmem:[#allocation7 + $0x10] sm:$0xff] }
  0x95   :  { %v938_v57 = vpack.c.bf16 %v576_v56, %v575_v55  ;;  %937 = vmatprep.subr.bf16.mxu1 %v936_v54 }
  0x97   :  { %895 = vmatpush1.bf16.msra.mxu0 %v894_v62  ;;  %v578_v62 = vld [vmem:[#allocation7 + $0x28] sm:$0xff] }
  0x98   :  { %897 = vmatprep.subr.bf16.mxu0 %v896_v63  ;;  %939 = vmatpush3.bf16.msra.mxu1 %v938_v57  ;;  %v942_v63 = vpack.c.bf16 %v578_v62, %v577_v61 }
  0x99   :  { %941 = vmatprep.subr.bf16.mxu1 %v940_v60  ;;  %v700_v60 = vld [vmem:[%s1180_s4] ss:$0 sm:$0xff] }
  0x9b   :  { %899 = vmatpush1.bf16.msra.mxu0 %v898_v4  ;;  %v580_v4 = vld [vmem:[#allocation7 + $0x38] sm:$0xff] }
  0x9c   :  { %901 = vmatprep.subr.bf16.mxu0 %v900_v5  ;;  %943 = vmatpush3.bf16.msra.mxu1 %v942_v63  ;;  %v946_v5 = vpack.c.bf16 %v580_v4, %v579_v3 }
  0x9d   :  { %945 = vmatprep.subr.bf16.mxu1 %v944_v2 }
  0x9f   :  { %903 = vmatpush1.bf16.msra.mxu0 %v902_v10  ;;  %v582_v10 = vld [vmem:[#allocation7 + $0x48] sm:$0xff] }
  0xa0   :  { %905 = vmatprep.subr.bf16.mxu0 %v904_v11  ;;  %947 = vmatpush3.bf16.msra.mxu1 %v946_v5  ;;  %v950_v11 = vpack.c.bf16 %v582_v10, %v581_v9 }
  0xa1   :  { %949 = vmatprep.subr.bf16.mxu1 %v948_v8 }
  0xa3   :  { %907 = vmatpush1.bf16.msra.mxu0 %v906_v16  ;;  %v584_v16 = vld [vmem:[#allocation7 + $0x58] sm:$0xff] }
  0xa4   :  { %909 = vmatprep.subr.bf16.mxu0 %v908_v17  ;;  %951 = vmatpush3.bf16.msra.mxu1 %v950_v11  ;;  %v954_v17 = vpack.c.bf16 %v584_v16, %v583_v15 }
  0xa5   :  { %953 = vmatprep.subr.bf16.mxu1 %v952_v14 }
  0xa7   :  { %911 = vmatpush1.bf16.msra.mxu0 %v910_v22  ;;  %v586_v22 = vld [vmem:[#allocation7 + $0x68] sm:$0xff] }
  0xa8   :  { %913 = vmatprep.subr.bf16.mxu0 %v912_v23  ;;  %955 = vmatpush3.bf16.msra.mxu1 %v954_v17  ;;  %v603_v23 = vld [vmem:[#allocation7 + $0xf0] sm:$0xff]  ;;  %v958_v25 = vpack.c.bf16 %v586_v22, %v585_v20 }
  0xa9   :  { %v960_v26 = vpack.c.bf16 %v604_v24, %v603_v23  ;;  %957 = vmatprep.subr.bf16.mxu1 %v956_v21 }
  0xab   :  { %915 = vmatpush1.bf16.msra.mxu0 %v914_v28  ;;  %v588_v28 = vld [vmem:[#allocation7 + $0x78] sm:$0xff] }
  0xac   :  { %917 = vmatprep.subr.bf16.mxu0 %v916_v29  ;;  %959 = vmatpush3.bf16.msra.mxu1 %v958_v25  ;;  %v962_v29 = vpack.c.bf16 %v588_v28, %v587_v27 }
  0xad   :  { %961 = vmatprep.subr.bf16.mxu1 %v960_v26 }
  0xaf   :  { %919 = vmatpush1.bf16.msra.mxu0 %v918_v34  ;;  %v265_v34 = vlaneseq }
  0xb0   :  { %921 = vmatprep.subr.bf16.mxu0 %v920_v35  ;;  %963 = vmatpush3.bf16.msra.mxu1 %v962_v29 }
  0xb1   :  { %v266_v35 = vshrl.u32 %v265_v34, 7 }
  0xb3   :  { %923 = vmatpush1.bf16.msra.mxu0 %v922_v40  ;;  %v267_v36 = vsub.s32 0, %v266_v35  ;;  %v271_v38 = vsub.s32 1, %v266_v35 }
  0xb4   :  { %925 = vmatprep.subr.bf16.mxu0 %v924_v41 }
  0xb5   :  { %v268_v39 = vrot.slane %v263_v37, %v267_v36  ;;  %v272_v40 = vrot.slane %v263_v37, %v271_v38 }
  0xb7   :  { %927 = vmatpush1.bf16.msra.mxu0 %v926_v44 }
  0xba   :  { %486 = vmatmul.mubr.f32.vlgmr.msra.gmra.mrb[0].mxu0 %v64_v45 }
 0x158   :  { %v345_v30 = vpop.f32.mrb[0].mxu1 }
 0x159   :  { %v347_v31 = vpop.f32.mrb[1].mxu1  ;;  %v346_v41 = vadd.f32 %v345_v30, %v268_v39 }
 0x15a   :  { %v348_v42 = vadd.f32 %v347_v31, %v272_v40 }
 0x15c   :  { %v558_v32 = vpop.f32.mrb[2].mxu1 }
 0x15d   :  { %v560_v33 = vpop.f32.mrb[3].mxu1 }
 0x18d   :  { %v487_v43 = vpop.f32.mrb[0].mxu0 }
 0x18e   :  { %v965_v44 = vadd.f32 %v487_v43, %v346_v41  ;;  %v489_v45 = vpop.f32.mrb[1].mxu0 }
 0x18f   :  { %v968_v46 = vadd.f32 %v489_v45, %v348_v42 }
 0x190   :  { %v966_v47 = vadd.f32 %v965_v44, %v558_v32 }
 0x191   :  { %v969_v48 = vadd.f32 %v968_v46, %v560_v33 }
 0x192   :  { %v563_v49 = vsub.f32 0.0, %v966_v47 }
 0x193   :  { %v564_v50 = vsub.f32 0.0, %v969_v48 }
 0x194   :  { %v565_v51 = vmul.f32 1.442695, %v563_v49 }
 0x195   :  { %v567_v52 = vmul.f32 1.442695, %v564_v50 }
 0x196   :  { %981 = vpow2.f32 %v565_v51 }
 0x197   :  { %983 = vpow2.f32 %v567_v52 }
 0x1a0   :  { %v982_v53 = vpop.eup %981 }
 0x1a1   :  { %v984_v54 = vpop.eup %983  ;;  %v569_v55 = vadd.f32 1.0, %v982_v53 }
 0x1a2   :  { %v570_v56 = vadd.f32 1.0, %v984_v54 }
 0x1a4   :  { %985 = vrcp.f32 %v570_v56 }
 0x1a5   :  { %987 = vrcp.f32 %v569_v55 }
 0x1ae   :  { %v986_v57 = vpop.eup %985 }
 0x1af   :  { %v988_v58 = vpop.eup %987  ;;  %676 = vmatprep.mubr.f32.mxu1 %v986_v57 }
 0x1b0   :  { %677 = vmatmul.mubr.f32.vlgmr.msra.gmra.mrb[4].mxu1 %v988_v58 }
 0x283   :  { %v733_v59 = vpop.f32.mrb[4].mxu1 }
 0x284   :  { %v734_v61 = vpop.f32.mrb[5].mxu1 }
 0x285   :  { %v735_v62 = vadd.f32 %v734_v61, %v733_v59 }
 0x287   :  { %v679_v63 = vadd.f32 %v735_v62, %v700_v60 }
 0x289   :  { %682 = vst [vmem:[#allocation8] sm:$0xff] %v679_v63 }
 0x28a   :  { %1066 = shalt.err (!%p1063_p0)
}
 0x28b   :  { %s1067_s13 = scalar_lea.hbm %s1181_s5, 128 }
 0x28c   :  { %p1068_p1 = scmp.ne.s32.totalorder %s1181_s5, %s1067_s13  ;;  %p1071_p2 = scmp.lt.u32.totalorder %s1067_s13, %s1181_s5 }
 0x28e   :  { %p1073_p3 = pnand %p1071_p2, %p1068_p1 }
 0x290   :  { %1076 = shalt.err (!%p1073_p3)
}
 0x291   :  { %692 = dma.vmem_to_hbm [thread:$0]  %s690_s9, 128, %s1181_s5, [#allocation4]  }
 0x292   :  { %1081 = dma.done.wait [#allocation4], 128  }
 0x293   :  { %1082 = vsyncadd [#allocation4], 4294967168 }
 0x294   :  { %696 = vsyncpa [#allocation3], 1 }
 0x295   :  { %697 = vsyncpa [#allocation6], 1 }
 0x296   :  { %698 = vsyncpa [#allocation4], 1 }

</bundles_post_ra>
